<compile_context>
chip_gen: v7x
topology: tpu7x:2x2x1
jax: 0.10.0
libtpu: 0.0.40
codegen_flags: <defaults>
</compile_context>

<pallas_src>
import jax
import jax.numpy as jnp
from jax.experimental import pallas as pl
from jax.experimental.pallas import tpu as pltpu


# ----------------------------------------------------------------------------
# Kernels
# ----------------------------------------------------------------------------
def _kernel_lane_dense(x_ref, w_ref, alpha_ref, o_ref):
    """Per-row dot product, exp, scale; lane-dense (8, tm//8) output slab.

    x_ref:     (tm, F)  VMEM
    w_ref:     (1, F)   VMEM (resident across all grid steps)
    alpha_ref: (1,)     SMEM scalar
    o_ref:     (8, tm//8) VMEM — row r of the tile lands at flat position r.
    """
    prod = x_ref[...] * w_ref[...]            # (tm, F)  VPU, broadcast over rows
    z = jnp.sum(prod, axis=-1)                # (tm,)    XLU cross-lane reduce
    y = alpha_ref[0] * jnp.exp(z)             # (tm,)    EUP exp + VPU scale
    o_ref[...] = y.reshape(o_ref.shape)       # packed, mostly-unmasked stores


def _kernel_col(x_ref, w_ref, alpha_ref, o_ref):
    """Fallback: same math, (tm, 1) column output (always lowers)."""
    z = jnp.sum(x_ref[...] * w_ref[...], axis=-1, keepdims=True)   # (tm, 1)
    o_ref[...] = alpha_ref[0] * jnp.exp(z)


# ----------------------------------------------------------------------------
# Wrapper
# ----------------------------------------------------------------------------
def _pick_tile(n):
    # Single tile for small N; cap at 4096 rows so VMEM stays tiny on every
    # generation (x block = tm x 128 padded lanes x 4B x 2 buffers ~ 4 MiB at
    # the cap) and large-N grids still give v7x's two TensorCores work.
    return int(min(4096, max(128, pl.next_power_of_2(max(int(n), 1)))))


def _build_call(kernel, lane_dense, n_pad, feat, tm):
    grid = (n_pad // tm,)
    if lane_dense:
        out_shape = jax.ShapeDtypeStruct((8 * (n_pad // tm), tm // 8), jnp.float32)
        out_spec = pl.BlockSpec((8, tm // 8), lambda i: (i, 0))
    else:
        out_shape = jax.ShapeDtypeStruct((n_pad, 1), jnp.float32)
        out_spec = pl.BlockSpec((tm, 1), lambda i: (i, 0))
    return pl.pallas_call(
        kernel,
        out_shape=out_shape,
        grid_spec=pltpu.PrefetchScalarGridSpec(
            num_scalar_prefetch=0,
            grid=grid,
            in_specs=[
                # x tile: (tm, F); F (the full feature dim) maps to lanes.
                pl.BlockSpec((tm, feat), lambda i: (i, 0)),
                # W as a (1, F) row; constant block index -> stays resident.
                pl.BlockSpec((1, feat), lambda i: (0, 0)),
                # alpha: scalar parameter in SMEM, untiled.
                pl.BlockSpec(memory_space=pltpu.MemorySpace.SMEM),
            ],
            out_specs=out_spec,
        ),
        compiler_params=pltpu.CompilerParams(
            dimension_semantics=("parallel",),
            # Explicit scoped-VMEM budget (v5e defaults to only 16 MiB).
            vmem_limit_bytes=32 * 1024 * 1024,
        ),
    )


def parametric_net_forward(x, W, alpha, *, tm=None):
    """alpha * exp(x @ W) via a row-tiled, lane-dense Pallas kernel."""
    N, F = x.shape
    x = jnp.asarray(x, jnp.float32)
    if tm is None:
        tm = _pick_tile(N)
    assert tm % 128 == 0, "row tile must be a multiple of 128"

    n_pad = int(pl.cdiv(N, tm)) * tm
    if n_pad != N:
        # Padded rows give alpha*exp(0); sliced away below.
        x = jnp.pad(x, ((0, n_pad - N), (0, 0)))

    w_row = jnp.asarray(W, jnp.float32).reshape(1, F)
    alpha = jnp.asarray(alpha, jnp.float32).reshape(1)

    try:
        out = _build_call(_kernel_lane_dense, True, n_pad, F, tm)(x, w_row, alpha)
        out = jax.block_until_ready(out)
    except Exception:
        # Robustness guard: if the lane-dense store layout fails to lower on
        # this toolchain, fall back to the lane-sparse (tm, 1) output kernel
        # (same math, same large tiles).
        out = _build_call(_kernel_col, False, n_pad, F, tm)(x, w_row, alpha)

    out = out.reshape(n_pad, 1)           # free layout plumbing in the wrapper
    return out[:N] if n_pad != N else out


# ----------------------------------------------------------------------------
# Parameter init (mirrors ParametricNet.__init__ shapes)
# ----------------------------------------------------------------------------
def init_parametric_net(key, num_features, init_alpha=1.0, is_beta_used=True):
    # TODO(synk): pysurvival's opt.initialization(init_method, W) transform is
    # approximated by a plain standard-normal draw (deterministic via the key).
    W = jax.random.normal(key, (num_features, 1), dtype=jnp.float32)
    alpha = jnp.array([1.0], dtype=jnp.float32) / init_alpha
    params = {"W": W, "alpha": alpha}
    if is_beta_used:
        # beta is a registered parameter but unused in forward().
        params["beta"] = jnp.array([1.001], dtype=jnp.float32) / init_alpha
    return params


if __name__ == "__main__":
    key = jax.random.PRNGKey(0)
    kx, kw = jax.random.split(key)

    batch = 16
    num_features = 32

    x = jax.random.normal(kx, (batch, num_features), dtype=jnp.float32)
    params = init_parametric_net(kw, num_features, init_alpha=1.0,
                                 is_beta_used=True)

    out = parametric_net_forward(x, params["W"], params["alpha"])
    out = jax.block_until_ready(out)

    # Reference check against plain JAX semantics of the PyTorch forward.
    ref = params["alpha"] * jnp.exp(x @ params["W"])
    assert out.shape == (batch, 1)
    assert jnp.allclose(out, ref, rtol=1e-4, atol=1e-4), \
        float(jnp.max(jnp.abs(out - ref)))

    print("KERNEL_OK")
</pallas_src>

<mosaic_0001>
module attributes {stable_mosaic.version = 11 : i64} {
  func.func @_kernel_lane_dense(%arg0: i32, %arg1: memref<128x32xf32, #tpu.memory_space<vmem>>, %arg2: memref<1x32xf32, #tpu.memory_space<vmem>>, %arg3: memref<1xf32, #tpu.memory_space<smem>>, %arg4: memref<8x16xf32, #tpu.memory_space<vmem>>) attributes {dimension_semantics = [#tpu.dimension_semantics<parallel>], iteration_bounds = array<i64: 1>, scalar_prefetch = 0 : i64, scratch_operands = 0 : i64, tpu.core_type = #tpu.core_type<tc>, window_params = [{transform_indices = @transform_0, window_bounds = array<i64: 128, 32>}, {pipeline_mode = #tpu.pipeline_mode<synchronous>, transform_indices = @transform_1, window_bounds = array<i64: 1, 32>}, {transform_indices = @transform_2, window_bounds = array<i64: 1>}, {transform_indices = @transform_3, window_bounds = array<i64: 8, 16>}]} {
    %c0 = arith.constant 0 : index
    %c0_0 = arith.constant 0 : index
    %0 = vector.load %arg1[%c0, %c0_0] : memref<128x32xf32, #tpu.memory_space<vmem>>, vector<128x32xf32>
    %c0_1 = arith.constant 0 : index
    %c0_2 = arith.constant 0 : index
    %1 = vector.load %arg2[%c0_1, %c0_2] : memref<1x32xf32, #tpu.memory_space<vmem>>, vector<1x32xf32>
    %2 = vector.broadcast %1 : vector<1x32xf32> to vector<128x32xf32>
    %3 = arith.mulf %0, %2 : vector<128x32xf32>
    %cst = arith.constant dense<0.000000e+00> : vector<128xf32>
    %4 = vector.multi_reduction <add>, %3, %cst [1] : vector<128x32xf32> to vector<128xf32>
    %c0_3 = arith.constant 0 : index
    %5 = memref.load %arg3[%c0_3] : memref<1xf32, #tpu.memory_space<smem>>
    %6 = math.exp %4 : vector<128xf32>
    %7 = vector.broadcast %5 : f32 to vector<128xf32>
    %8 = arith.mulf %7, %6 : vector<128xf32>
    %9 = vector.shape_cast %8 : vector<128xf32> to vector<8x16xf32>
    %c0_4 = arith.constant 0 : index
    %c0_5 = arith.constant 0 : index
    %10 = vector.load %arg4[%c0_4, %c0_5] : memref<8x16xf32, #tpu.memory_space<vmem>>, vector<8x16xf32>
    tpu.vector_store %arg4[%c0_4, %c0_5], %9 {strides = array<i32>} : memref<8x16xf32, #tpu.memory_space<vmem>>, vector<8x16xf32>,
    return
  }
  func.func @transform_0(%arg0: i32) -> (i32, i32) {
    %c0_i32 = arith.constant 0 : i32
    %c0_i32_0 = arith.constant 0 : i32
    return %arg0, %c0_i32 : i32, i32
  }
  func.func @transform_1(%arg0: i32) -> (i32, i32) {
    %c0_i32 = arith.constant 0 : i32
    %c0_i32_0 = arith.constant 0 : i32
    %c0_i32_1 = arith.constant 0 : i32
    return %c0_i32, %c0_i32_0 : i32, i32
  }
  func.func @transform_2(%arg0: i32) -> i32 {
    %c0_i32 = arith.constant 0 : i32
    %c0_i32_0 = arith.constant 0 : i32
    return %c0_i32 : i32
  }
  func.func @transform_3(%arg0: i32) -> (i32, i32) {
    %c0_i32 = arith.constant 0 : i32
    %c0_i32_0 = arith.constant 0 : i32
    return %arg0, %c0_i32 : i32, i32
  }
}

module attributes {stable_mosaic.version = 11 : i64} {
  func.func @_kernel_col(%arg0: i32, %arg1: memref<128x32xf32, #tpu.memory_space<vmem>>, %arg2: memref<1x32xf32, #tpu.memory_space<vmem>>, %arg3: memref<1xf32, #tpu.memory_space<smem>>, %arg4: memref<128x1xf32, #tpu.memory_space<vmem>>) attributes {dimension_semantics = [#tpu.dimension_semantics<parallel>], iteration_bounds = array<i64: 1>, scalar_prefetch = 0 : i64, scratch_operands = 0 : i64, tpu.core_type = #tpu.core_type<tc>, window_params = [{transform_indices = @transform_0, window_bounds = array<i64: 128, 32>}, {pipeline_mode = #tpu.pipeline_mode<synchronous>, transform_indices = @transform_1, window_bounds = array<i64: 1, 32>}, {transform_indices = @transform_2, window_bounds = array<i64: 1>}, {transform_indices = @transform_3, window_bounds = array<i64: 128, 1>}]} {
    %c0 = arith.constant 0 : index
    %c0_0 = arith.constant 0 : index
    %0 = vector.load %arg1[%c0, %c0_0] : memref<128x32xf32, #tpu.memory_space<vmem>>, vector<128x32xf32>
    %c0_1 = arith.constant 0 : index
    %c0_2 = arith.constant 0 : index
    %1 = vector.load %arg2[%c0_1, %c0_2] : memref<1x32xf32, #tpu.memory_space<vmem>>, vector<1x32xf32>
    %2 = vector.broadcast %1 : vector<1x32xf32> to vector<128x32xf32>
    %3 = arith.mulf %0, %2 : vector<128x32xf32>
    %cst = arith.constant dense<0.000000e+00> : vector<128xf32>
    %4 = vector.multi_reduction <add>, %3, %cst [1] : vector<128x32xf32> to vector<128xf32>
    %5 = vector.shape_cast %4 : vector<128xf32> to vector<128x1xf32>
    %c0_3 = arith.constant 0 : index
    %6 = memref.load %arg3[%c0_3] : memref<1xf32, #tpu.memory_space<smem>>
    %7 = math.exp %5 : vector<128x1xf32>
    %8 = vector.broadcast %6 : f32 to vector<128x1xf32>
    %9 = arith.mulf %8, %7 : vector<128x1xf32>
    %c0_4 = arith.constant 0 : index
    %c0_5 = arith.constant 0 : index
    %10 = vector.load %arg4[%c0_4, %c0_5] : memref<128x1xf32, #tpu.memory_space<vmem>>, vector<128x1xf32>
    tpu.vector_store %arg4[%c0_4, %c0_5], %9 {strides = array<i32>} : memref<128x1xf32, #tpu.memory_space<vmem>>, vector<128x1xf32>,
    return
  }
  func.func @transform_0(%arg0: i32) -> (i32, i32) {
    %c0_i32 = arith.constant 0 : i32
    %c0_i32_0 = arith.constant 0 : i32
    return %arg0, %c0_i32 : i32, i32
  }
  func.func @transform_1(%arg0: i32) -> (i32, i32) {
    %c0_i32 = arith.constant 0 : i32
    %c0_i32_0 = arith.constant 0 : i32
    %c0_i32_1 = arith.constant 0 : i32
    return %c0_i32, %c0_i32_0 : i32, i32
  }
  func.func @transform_2(%arg0: i32) -> i32 {
    %c0_i32 = arith.constant 0 : i32
    %c0_i32_0 = arith.constant 0 : i32
    return %c0_i32 : i32
  }
  func.func @transform_3(%arg0: i32) -> (i32, i32) {
    %c0_i32 = arith.constant 0 : i32
    %c0_i32_0 = arith.constant 0 : i32
    return %arg0, %c0_i32 : i32, i32
  }
}

</mosaic_0001>

<bundles_post_ra>
// kernel: tpu_custom_call.1
= control target key start
LH: loop header
LB: loop body
LE: loop exit
PB: predicated region body
PF: predicated region fallthrough
CT: control target
= control target key end

     0   :  { %vm55_vm0 = vcmask 261120   ;;  %s467_s0 = inlined_call_operand.vmem [shape: f32[128,32], index: 0, kind: input, shape index: {}]   ;;  %s468_s1 = inlined_call_operand.vmem [shape: f32[1,32], index: 1, kind: input, shape index: {}]   ;;  %s469_s2 = inlined_call_operand.<no memory space> [shape: f32[1], index: 2, kind: input, shape index: {}]   ;;  %s470_s3 = inlined_call_operand.hbm [shape: f32[8,16], index: 3, kind: output, shape index: {}]  }
   0x1   :  { %v18_v0 = vld [vmem:[%s467_s0 + $0x10] sm:$0xff]  ;;  %v277_v1 = vld [vmem:[%s468_s1] ss:$0 sm:$0xff]  ;;  %v19_v5 = vld [vmem:[%s467_s0 + $0x18] sm:$0xff] }
   0x2   :  { %v16_v2 = vld [vmem:[%s467_s0] sm:$0xff]  ;;  %v41_v3 = vmul.f32 %v277_v1, %v18_v0  ;;  %v17_v6 = vld [vmem:[%s467_s0 + $0x8] sm:$0xff]  ;;  %v42_v7 = vmul.f32 %v277_v1, %v19_v5 }
   0x3   :  { %v39_v4 = vmul.f32 %v277_v1, %v16_v2  ;;  %v40_v8 = vmul.f32 %v277_v1, %v17_v6  ;;  %v21_v9 = vld [vmem:[%s467_s0 + $0x28] sm:$0xff]  ;;  %v20_v10 = vld [vmem:[%s467_s0 + $0x20] sm:$0xff] }
   0x4   :  { %v62_v11 = vsel %vm55_vm0, %v41_v3, 0.0  ;;  %v65_v13 = vsel %vm55_vm0, %v42_v7, 0.0  ;;  %v44_v15 = vmul.f32 %v277_v1, %v21_v9  ;;  %v43_v16 = vmul.f32 %v277_v1, %v20_v10 }
   0x5   :  { %v56_v12 = vsel %vm55_vm0, %v39_v4, 0.0  ;;  %63 = vadd.xlane.f32.xlu1 %v62_v11  ;;  %v59_v14 = vsel %vm55_vm0, %v40_v8, 0.0 }
   0x6   :  { %57 = vadd.xlane.f32.xlu0 %v56_v12 }
   0x7   :  { %9 = vsyncpa [#allocation4], 0  ;;  %v23_v17 = vld [vmem:[%s467_s0 + $0x38] sm:$0xff]  ;;  %v22_v18 = vld [vmem:[%s467_s0 + $0x30] sm:$0xff]  ;;  %v71_v19 = vsel %vm55_vm0, %v44_v15, 0.0  ;;  %v68_v20 = vsel %vm55_vm0, %v43_v16, 0.0  ;;  %v170_v5 = vlaneseq }
   0x8   :  { %v46_v21 = vmul.f32 %v277_v1, %v23_v17  ;;  %v45_v22 = vmul.f32 %v277_v1, %v22_v18  ;;  %v25_v23 = vld [vmem:[%s467_s0 + $0x48] sm:$0xff]  ;;  %v24_v24 = vld [vmem:[%s467_s0 + $0x40] sm:$0xff]  ;;  %v27_v29 = vld [vmem:[%s467_s0 + $0x58] sm:$0xff]  ;;  %vm181_vm1 = vcmask 130112   ;;  %vm246_vm2 = vcmask 1041409  }
   0x9   :  { %66 = vadd.xlane.f32.xlu1 %v65_v13  ;;  %v48_v27 = vmul.f32 %v277_v1, %v25_v23  ;;  %v47_v28 = vmul.f32 %v277_v1, %v24_v24  ;;  %v26_v30 = vld [vmem:[%s467_s0 + $0x50] sm:$0xff]  ;;  %v50_v33 = vmul.f32 %v277_v1, %v27_v29  ;;  %v29_v35 = vld [vmem:[%s467_s0 + $0x68] sm:$0xff]  ;;  %v28_v36 = vld [vmem:[%s467_s0 + $0x60] sm:$0xff]  ;;  %v171_v13 = vand.u32 127, %v170_v5 }
   0xa   :  { %60 = vadd.xlane.f32.xlu0 %v59_v14  ;;  %v77_v25 = vsel %vm55_vm0, %v46_v21, 0.0  ;;  %v74_v26 = vsel %vm55_vm0, %v45_v22, 0.0  ;;  %v49_v34 = vmul.f32 %v277_v1, %v26_v30  ;;  %v52_v39 = vmul.f32 %v277_v1, %v29_v35  ;;  %v31_v41 = vld [vmem:[%s467_s0 + $0x78] sm:$0xff]  ;;  %v30_v42 = vld [vmem:[%s467_s0 + $0x70] sm:$0xff] }
   0xb   :  { %v83_v31 = vsel %vm55_vm0, %v48_v27, 0.0  ;;  %v80_v32 = vsel %vm55_vm0, %v47_v28, 0.0  ;;  %v89_v37 = vsel %vm55_vm0, %v50_v33, 0.0  ;;  %v51_v40 = vmul.f32 %v277_v1, %v28_v36 }
   0xc   :  { %v86_v38 = vsel %vm55_vm0, %v49_v34, 0.0  ;;  %v95_v43 = vsel %vm55_vm0, %v52_v39, 0.0  ;;  %v54_v45 = vmul.f32 %v277_v1, %v31_v41  ;;  %v53_v46 = vmul.f32 %v277_v1, %v30_v42 }
   0xd   :  { %72 = vadd.xlane.f32.xlu1 %v71_v19  ;;  %v92_v44 = vsel %vm55_vm0, %v51_v40, 0.0  ;;  %v173_v22 = vshrl.u32 %v170_v5, 7  ;;  %v137_v27 = vstv %s469_s2  ;;  %vm248_vm3 = vcmask 1042434   ;;  %s335_s2 = smov [#allocation3]  }
   0xe   :  { %69 = vadd.xlane.f32.xlu0 %v68_v20  ;;  %v101_v47 = vsel %vm55_vm0, %v54_v45, 0.0  ;;  %v98_v48 = vsel %vm55_vm0, %v53_v46, 0.0  ;;  %v176_v20 = vadd.s32 4294967288, %v171_v13  ;;  %vm250_vm4 = vcmask 1043459   ;;  %s269_s19 = sshll.u32 %s335_s2, 4  ;;  %s270_s19 = int_to_ptr.vmem [resolvable:$true] %s269_s19 }
   0xf   :  { %v428_v34 = vsub.s32 %v171_v13, %v173_v22  ;;  %vm252_vm5 = vcmask 1044484   ;;  %vm254_vm6 = vcmask 1045509   ;;  %vm256_vm7 = vcmask 1046534   ;;  %s311_s20 = scalar_lea.vmem %s270_s19, 128  ;;  %p316_p1 = scmp.lt.s32.totalorder %s270_s19, %s270_s19 }
  0x10   :  { %vm258_vm8 = vcmask 1047559   ;;  %vm261_vm9 = vcmask 130048   ;;  %p312_p0 = scmp.ne.s32.totalorder %s270_s19, %s311_s20  ;;  %p317_p2 = scmp.lt.s32.totalorder %s311_s20, %s311_s20 }
  0x11   :  { %78 = vadd.xlane.f32.xlu1 %v77_v25 }
  0x12   :  { %75 = vadd.xlane.f32.xlu0 %v74_v26  ;;  %p318_p3 = por %p317_p2, %p316_p1 }
  0x14   :  { %p319_p4 = pnand %p318_p3, %p312_p0 }
  0x15   :  { %84 = vadd.xlane.f32.xlu1 %v83_v31  ;;  %v426_v31 = vsub.s32 %v176_v20, %v173_v22 }
  0x16   :  { %81 = vadd.xlane.f32.xlu0 %v80_v32 }
  0x19   :  { %90 = vadd.xlane.f32.xlu1 %v89_v37 }
  0x1a   :  { %87 = vadd.xlane.f32.xlu0 %v86_v38 }
  0x1d   :  { %96 = vadd.xlane.f32.xlu1 %v95_v43 }
  0x1e   :  { %93 = vadd.xlane.f32.xlu0 %v92_v44 }
  0x21   :  { %102 = vadd.xlane.f32.xlu1 %v101_v47 }
  0x22   :  { %99 = vadd.xlane.f32.xlu0 %v98_v48 }
  0x92   :  { %v64_v49 = vpop.xlane.xlu1 %63 }
  0x93   :  { %v58_v50 = vpop.xlane.xlu0 %57  ;;  %v109_v53 = vmul.f32 1.442695, %v64_v49 }
  0x94   :  { %v105_v56 = vmul.f32 1.442695, %v58_v50 }
  0x95   :  { %279 = vpow2.f32 %v109_v53 }
  0x96   :  { %v67_v51 = vpop.xlane.xlu1 %66  ;;  %281 = vpow2.f32 %v105_v56 }
  0x97   :  { %v61_v52 = vpop.xlane.xlu0 %60  ;;  %v111_v57 = vmul.f32 1.442695, %v67_v51 }
  0x98   :  { %v107_v58 = vmul.f32 1.442695, %v61_v52 }
  0x99   :  { %283 = vpow2.f32 %v111_v57 }
  0x9a   :  { %v73_v54 = vpop.xlane.xlu1 %72  ;;  %285 = vpow2.f32 %v107_v58 }
  0x9b   :  { %v70_v55 = vpop.xlane.xlu0 %69  ;;  %v115_v59 = vmul.f32 1.442695, %v73_v54 }
  0x9c   :  { %v113_v62 = vmul.f32 1.442695, %v70_v55 }
  0x9d   :  { %287 = vpow2.f32 %v115_v59 }
  0x9e   :  { %v79_v60 = vpop.xlane.xlu1 %78  ;;  %289 = vpow2.f32 %v113_v62 }
  0x9f   :  { %v76_v61 = vpop.xlane.xlu0 %75  ;;  %v119_v63 = vmul.f32 1.442695, %v79_v60  ;;  %v280_v10 = vpop.eup %279 }
  0xa0   :  { %v117_v0 = vmul.f32 1.442695, %v76_v61  ;;  %v282_v11 = vpop.eup %281  ;;  %v140_v36 = vmul.f32 %v280_v10, %v137_v27 }
  0xa1   :  { %291 = vpow2.f32 %v119_v63  ;;  %v138_v40 = vmul.f32 %v282_v11, %v137_v27 }
  0xa2   :  { %v85_v1 = vpop.xlane.xlu1 %84  ;;  %293 = vpow2.f32 %v117_v0  ;;  %v186_v50 = vrot.slane %v140_v36, %v428_v34 }
  0xa3   :  { %v82_v2 = vpop.xlane.xlu0 %81  ;;  %v123_v3 = vmul.f32 1.442695, %v85_v1  ;;  %v284_v12 = vpop.eup %283  ;;  %v175_v54 = vrot.slane %v138_v40, %v428_v34 }
  0xa4   :  { %v121_v4 = vmul.f32 1.442695, %v82_v2  ;;  %v286_v16 = vpop.eup %285  ;;  %v141_v32 = vmul.f32 %v284_v12, %v137_v27 }
  0xa5   :  { %295 = vpow2.f32 %v123_v3  ;;  %v139_v35 = vmul.f32 %v286_v16, %v137_v27 }
  0xa6   :  { %v91_v6 = vpop.xlane.xlu1 %90  ;;  %297 = vpow2.f32 %v121_v4  ;;  %v190_v44 = vrot.slane %v141_v32, %v426_v31 }
  0xa7   :  { %v88_v7 = vpop.xlane.xlu0 %87  ;;  %v127_v8 = vmul.f32 1.442695, %v91_v6  ;;  %v288_v19 = vpop.eup %287  ;;  %v180_v47 = vrot.slane %v139_v35, %v426_v31 }
  0xa8   :  { %v125_v9 = vmul.f32 1.442695, %v88_v7  ;;  %v290_v21 = vpop.eup %289  ;;  %v143_v37 = vmul.f32 %v288_v19, %v137_v27  ;;  %v191_v61 = vsel %vm181_vm1, %v190_v44, %v186_v50 }
  0xa9   :  { %299 = vpow2.f32 %v127_v8  ;;  %v142_v38 = vmul.f32 %v290_v21, %v137_v27  ;;  %v182_v63 = vsel %vm181_vm1, %v180_v47, %v175_v54 }
  0xaa   :  { %301 = vpow2.f32 %v125_v9  ;;  %v97_v14 = vpop.xlane.xlu1 %96  ;;  %v199_v51 = vrot.slane %v143_v37, %v426_v31  ;;  %v247_v10 = vsel %vm246_vm2, %v191_v61, %v182_v63 }
  0xab   :  { %v94_v15 = vpop.xlane.xlu0 %93  ;;  %v131_v17 = vmul.f32 1.442695, %v97_v14  ;;  %v292_v23 = vpop.eup %291  ;;  %v195_v52 = vrot.slane %v142_v38, %v428_v34 }
  0xac   :  { %v129_v18 = vmul.f32 1.442695, %v94_v15  ;;  %v294_v26 = vpop.eup %293  ;;  %v145_v41 = vmul.f32 %v292_v23, %v137_v27 }
  0xad   :  { %303 = vpow2.f32 %v131_v17  ;;  %v144_v42 = vmul.f32 %v294_v26, %v137_v27  ;;  %v200_v2 = vsel %vm181_vm1, %v199_v51, %v195_v52 }
  0xae   :  { %305 = vpow2.f32 %v129_v18  ;;  %v103_v24 = vpop.xlane.xlu1 %102  ;;  %v208_v55 = vrot.slane %v145_v41, %v426_v31  ;;  %v249_v13 = vsel %vm248_vm3, %v200_v2, %v247_v10 }
  0xaf   :  { %v100_v25 = vpop.xlane.xlu0 %99  ;;  %v135_v28 = vmul.f32 1.442695, %v103_v24  ;;  %v296_v30 = vpop.eup %295  ;;  %v204_v56 = vrot.slane %v144_v42, %v428_v34 }
  0xb0   :  { %v133_v29 = vmul.f32 1.442695, %v100_v25  ;;  %v298_v33 = vpop.eup %297  ;;  %v147_v45 = vmul.f32 %v296_v30, %v137_v27 }
  0xb1   :  { %307 = vpow2.f32 %v135_v28  ;;  %v146_v46 = vmul.f32 %v298_v33, %v137_v27  ;;  %v209_v5 = vsel %vm181_vm1, %v208_v55, %v204_v56 }
  0xb2   :  { %309 = vpow2.f32 %v133_v29  ;;  %v217_v58 = vrot.slane %v147_v45, %v426_v31  ;;  %v251_v16 = vsel %vm250_vm4, %v209_v5, %v249_v13 }
  0xb3   :  { %v300_v39 = vpop.eup %299  ;;  %v213_v59 = vrot.slane %v146_v46, %v428_v34 }
  0xb4   :  { %v302_v43 = vpop.eup %301  ;;  %v149_v48 = vmul.f32 %v300_v39, %v137_v27 }
  0xb5   :  { %v148_v49 = vmul.f32 %v302_v43, %v137_v27  ;;  %v218_v9 = vsel %vm181_vm1, %v217_v58, %v213_v59 }
  0xb6   :  { %v226_v1 = vrot.slane %v149_v48, %v426_v31  ;;  %v253_v18 = vsel %vm252_vm5, %v218_v9, %v251_v16 }
  0xb7   :  { %v304_v53 = vpop.eup %303  ;;  %v222_v0 = vrot.slane %v148_v49, %v428_v34 }
  0xb8   :  { %v306_v57 = vpop.eup %305  ;;  %v151_v60 = vmul.f32 %v304_v53, %v137_v27 }
  0xb9   :  { %v150_v62 = vmul.f32 %v306_v57, %v137_v27  ;;  %v227_v12 = vsel %vm181_vm1, %v226_v1, %v222_v0 }
  0xba   :  { %v235_v3 = vrot.slane %v151_v60, %v426_v31  ;;  %v255_v19 = vsel %vm254_vm6, %v227_v12, %v253_v18 }
  0xbb   :  { %v308_v4 = vpop.eup %307  ;;  %v231_v6 = vrot.slane %v150_v62, %v428_v34 }
  0xbc   :  { %v310_v7 = vpop.eup %309  ;;  %v153_v8 = vmul.f32 %v308_v4, %v137_v27 }
  0xbd   :  { %v152_v11 = vmul.f32 %v310_v7, %v137_v27  ;;  %v236_v14 = vsel %vm181_vm1, %v235_v3, %v231_v6 }
  0xbe   :  { %v244_v15 = vrot.slane %v153_v8, %v426_v31  ;;  %v257_v21 = vsel %vm256_vm7, %v236_v14, %v255_v19 }
  0xbf   :  { %v240_v17 = vrot.slane %v152_v11, %v428_v34 }
  0xc1   :  { %v245_v20 = vsel %vm181_vm1, %v244_v15, %v240_v17 }
  0xc2   :  { %v259_v22 = vsel %vm258_vm8, %v245_v20, %v257_v21 }
  0xc3   :  { %262 = vst.msk [vmem:[#allocation3] sm:$0xff] %vm261_vm9, %v259_v22 }
  0xc4   :  { %322 = shalt.err (!%p319_p4)
}
  0xc5   :  { %s323_s23 = scalar_lea.hbm %s470_s3, 128 }
  0xc6   :  { %p324_p5 = scmp.ne.s32.totalorder %s470_s3, %s323_s23  ;;  %p327_p6 = scmp.lt.u32.totalorder %s323_s23, %s470_s3 }
  0xc8   :  { %p329_p7 = pnand %p327_p6, %p324_p5 }
  0xca   :  { %332 = shalt.err (!%p329_p7)
}
  0xcb   :  { %272 = dma.vmem_to_hbm [thread:$0]  %s270_s19, 128, %s470_s3, [#allocation4]  }
  0xcc   :  { %333 = dma.done.wait [#allocation4], 128  }
  0xcd   :  { %334 = vsyncadd [#allocation4], 4294967168 }
  0xce   :  { %276 = vsyncpa [#allocation4], 1 }

// kernel: tpu_custom_call.1
= control target key start
LH: loop header
LB: loop body
LE: loop exit
PB: predicated region body
PF: predicated region fallthrough
CT: control target
= control target key end

     0   :  { %vm54_vm0 = vcmask 261120   ;;  %vm153_vm1 = vcmask 7168   ;;  %s379_s0 = inlined_call_operand.vmem [shape: f32[128,32], index: 0, kind: input, shape index: {}]   ;;  %s380_s1 = inlined_call_operand.vmem [shape: f32[1,32], index: 1, kind: input, shape index: {}]   ;;  %s381_s2 = inlined_call_operand.<no memory space> [shape: f32[1], index: 2, kind: input, shape index: {}]   ;;  %s382_s3 = inlined_call_operand.vmem [shape: f32[128,1], index: 3, kind: output, shape index: {}]  }
   0x1   :  { %v17_v0 = vld [vmem:[%s379_s0 + $0x10] sm:$0xff]  ;;  %v174_v1 = vld [vmem:[%s380_s1] ss:$0 sm:$0xff]  ;;  %v18_v5 = vld [vmem:[%s379_s0 + $0x18] sm:$0xff]  ;;  %v297_v61 = vstv %s381_s2 }
   0x2   :  { %v15_v2 = vld [vmem:[%s379_s0] sm:$0xff]  ;;  %v40_v3 = vmul.f32 %v174_v1, %v17_v0  ;;  %v16_v6 = vld [vmem:[%s379_s0 + $0x8] sm:$0xff]  ;;  %v41_v7 = vmul.f32 %v174_v1, %v18_v5  ;;  %v22_v17 = vld [vmem:[%s379_s0 + $0x38] sm:$0xff] }
   0x3   :  { %v38_v4 = vmul.f32 %v174_v1, %v15_v2  ;;  %v39_v8 = vmul.f32 %v174_v1, %v16_v6  ;;  %v20_v9 = vld [vmem:[%s379_s0 + $0x28] sm:$0xff]  ;;  %v19_v10 = vld [vmem:[%s379_s0 + $0x20] sm:$0xff]  ;;  %v21_v18 = vld [vmem:[%s379_s0 + $0x30] sm:$0xff]  ;;  %v45_v21 = vmul.f32 %v174_v1, %v22_v17 }
   0x4   :  { %v61_v11 = vsel %vm54_vm0, %v40_v3, 0.0  ;;  %v64_v13 = vsel %vm54_vm0, %v41_v7, 0.0  ;;  %v43_v15 = vmul.f32 %v174_v1, %v20_v9  ;;  %v42_v16 = vmul.f32 %v174_v1, %v19_v10  ;;  %v24_v23 = vld [vmem:[%s379_s0 + $0x48] sm:$0xff]  ;;  %v23_v24 = vld [vmem:[%s379_s0 + $0x40] sm:$0xff]  ;;  %v26_v29 = vld [vmem:[%s379_s0 + $0x58] sm:$0xff] }
   0x5   :  { %v55_v12 = vsel %vm54_vm0, %v38_v4, 0.0  ;;  %62 = vadd.xlane.f32.xlu1 %v61_v11  ;;  %v58_v14 = vsel %vm54_vm0, %v39_v8, 0.0  ;;  %v44_v22 = vmul.f32 %v174_v1, %v21_v18  ;;  %v76_v25 = vsel %vm54_vm0, %v45_v21, 0.0  ;;  %v25_v30 = vld [vmem:[%s379_s0 + $0x50] sm:$0xff]  ;;  %v28_v35 = vld [vmem:[%s379_s0 + $0x68] sm:$0xff]  ;;  %v27_v36 = vld [vmem:[%s379_s0 + $0x60] sm:$0xff] }
   0x6   :  { %56 = vadd.xlane.f32.xlu0 %v55_v12  ;;  %v70_v19 = vsel %vm54_vm0, %v43_v15, 0.0  ;;  %v67_v20 = vsel %vm54_vm0, %v42_v16, 0.0  ;;  %v47_v27 = vmul.f32 %v174_v1, %v24_v23  ;;  %v46_v28 = vmul.f32 %v174_v1, %v23_v24  ;;  %v30_v41 = vld [vmem:[%s379_s0 + $0x78] sm:$0xff]  ;;  %v29_v42 = vld [vmem:[%s379_s0 + $0x70] sm:$0xff] }
   0x7   :  { %v73_v26 = vsel %vm54_vm0, %v44_v22, 0.0  ;;  %v49_v33 = vmul.f32 %v174_v1, %v26_v29  ;;  %v48_v34 = vmul.f32 %v174_v1, %v25_v30  ;;  %v51_v39 = vmul.f32 %v174_v1, %v28_v35 }
   0x8   :  { %v82_v31 = vsel %vm54_vm0, %v47_v27, 0.0  ;;  %v79_v32 = vsel %vm54_vm0, %v46_v28, 0.0  ;;  %v50_v40 = vmul.f32 %v174_v1, %v27_v36  ;;  %v53_v45 = vmul.f32 %v174_v1, %v30_v41 }
   0x9   :  { %65 = vadd.xlane.f32.xlu1 %v64_v13  ;;  %v88_v37 = vsel %vm54_vm0, %v49_v33, 0.0  ;;  %v85_v38 = vsel %vm54_vm0, %v48_v34, 0.0  ;;  %v94_v43 = vsel %vm54_vm0, %v51_v39, 0.0  ;;  %v52_v46 = vmul.f32 %v174_v1, %v29_v42 }
   0xa   :  { %59 = vadd.xlane.f32.xlu0 %v58_v14  ;;  %v91_v44 = vsel %vm54_vm0, %v50_v40, 0.0  ;;  %v100_v47 = vsel %vm54_vm0, %v53_v45, 0.0 }
   0xb   :  { %v97_v48 = vsel %vm54_vm0, %v52_v46, 0.0 }
   0xd   :  { %71 = vadd.xlane.f32.xlu1 %v70_v19 }
   0xe   :  { %68 = vadd.xlane.f32.xlu0 %v67_v20 }
  0x11   :  { %77 = vadd.xlane.f32.xlu1 %v76_v25 }
  0x12   :  { %74 = vadd.xlane.f32.xlu0 %v73_v26 }
  0x15   :  { %83 = vadd.xlane.f32.xlu1 %v82_v31 }
  0x16   :  { %80 = vadd.xlane.f32.xlu0 %v79_v32 }
  0x19   :  { %89 = vadd.xlane.f32.xlu1 %v88_v37 }
  0x1a   :  { %86 = vadd.xlane.f32.xlu0 %v85_v38 }
  0x1d   :  { %95 = vadd.xlane.f32.xlu1 %v94_v43 }
  0x1e   :  { %92 = vadd.xlane.f32.xlu0 %v91_v44 }
  0x21   :  { %101 = vadd.xlane.f32.xlu1 %v100_v47 }
  0x22   :  { %98 = vadd.xlane.f32.xlu0 %v97_v48 }
  0x92   :  { %v63_v49 = vpop.xlane.xlu1 %62 }
  0x93   :  { %v57_v50 = vpop.xlane.xlu0 %56  ;;  %v108_v51 = vmul.f32 1.442695, %v63_v49 }
  0x94   :  { %v104_v52 = vmul.f32 1.442695, %v57_v50 }
  0x95   :  { %175 = vpow2.f32 %v108_v51 }
  0x96   :  { %177 = vpow2.f32 %v104_v52  ;;  %v66_v53 = vpop.xlane.xlu1 %65 }
  0x97   :  { %v60_v54 = vpop.xlane.xlu0 %59  ;;  %v110_v55 = vmul.f32 1.442695, %v66_v53 }
  0x98   :  { %v106_v56 = vmul.f32 1.442695, %v60_v54 }
  0x99   :  { %179 = vpow2.f32 %v110_v55 }
  0x9a   :  { %181 = vpow2.f32 %v106_v56  ;;  %v72_v57 = vpop.xlane.xlu1 %71 }
  0x9b   :  { %v69_v58 = vpop.xlane.xlu0 %68  ;;  %v114_v59 = vmul.f32 1.442695, %v72_v57 }
  0x9c   :  { %v112_v60 = vmul.f32 1.442695, %v69_v58 }
  0x9d   :  { %183 = vpow2.f32 %v114_v59 }
  0x9e   :  { %185 = vpow2.f32 %v112_v60  ;;  %v78_v62 = vpop.xlane.xlu1 %77 }
  0x9f   :  { %v75_v63 = vpop.xlane.xlu0 %74  ;;  %v176_v0 = vpop.eup %175  ;;  %v118_v1 = vmul.f32 1.442695, %v78_v62 }
  0xa0   :  { %v116_v2 = vmul.f32 1.442695, %v75_v63  ;;  %v178_v3 = vpop.eup %177  ;;  %v139_v4 = vmul.f32 %v176_v0, %v297_v61 }
  0xa1   :  { %v137_v5 = vmul.f32 %v178_v3, %v297_v61  ;;  %187 = vpow2.f32 %v118_v1 }
  0xa2   :  { %156 = vst.msk [vmem:[%s382_s3 + $0x10] sm:$0xff] %vm153_vm1, %v139_v4  ;;  %189 = vpow2.f32 %v116_v2  ;;  %v84_v6 = vpop.xlane.xlu1 %83 }
  0xa3   :  { %v81_v7 = vpop.xlane.xlu0 %80  ;;  %v180_v8 = vpop.eup %179  ;;  %154 = vst.msk [vmem:[%s382_s3] sm:$0xff] %vm153_vm1, %v137_v5  ;;  %v122_v9 = vmul.f32 1.442695, %v84_v6 }
  0xa4   :  { %v120_v10 = vmul.f32 1.442695, %v81_v7  ;;  %v182_v11 = vpop.eup %181  ;;  %v140_v12 = vmul.f32 %v180_v8, %v297_v61 }
  0xa5   :  { %v138_v13 = vmul.f32 %v182_v11, %v297_v61  ;;  %191 = vpow2.f32 %v122_v9 }
  0xa6   :  { %157 = vst.msk [vmem:[%s382_s3 + $0x18] sm:$0xff] %vm153_vm1, %v140_v12  ;;  %193 = vpow2.f32 %v120_v10  ;;  %v90_v14 = vpop.xlane.xlu1 %89 }
  0xa7   :  { %v87_v15 = vpop.xlane.xlu0 %86  ;;  %v184_v16 = vpop.eup %183  ;;  %155 = vst.msk [vmem:[%s382_s3 + $0x8] sm:$0xff] %vm153_vm1, %v138_v13  ;;  %v126_v17 = vmul.f32 1.442695, %v90_v14 }
  0xa8   :  { %v124_v18 = vmul.f32 1.442695, %v87_v15  ;;  %v186_v19 = vpop.eup %185  ;;  %v142_v20 = vmul.f32 %v184_v16, %v297_v61 }
  0xa9   :  { %v141_v21 = vmul.f32 %v186_v19, %v297_v61  ;;  %195 = vpow2.f32 %v126_v17 }
  0xaa   :  { %159 = vst.msk [vmem:[%s382_s3 + $0x28] sm:$0xff] %vm153_vm1, %v142_v20  ;;  %197 = vpow2.f32 %v124_v18  ;;  %v96_v22 = vpop.xlane.xlu1 %95 }
  0xab   :  { %v93_v23 = vpop.xlane.xlu0 %92  ;;  %v188_v24 = vpop.eup %187  ;;  %158 = vst.msk [vmem:[%s382_s3 + $0x20] sm:$0xff] %vm153_vm1, %v141_v21  ;;  %v130_v25 = vmul.f32 1.442695, %v96_v22 }
  0xac   :  { %v128_v26 = vmul.f32 1.442695, %v93_v23  ;;  %v190_v27 = vpop.eup %189  ;;  %v144_v28 = vmul.f32 %v188_v24, %v297_v61 }
  0xad   :  { %v143_v29 = vmul.f32 %v190_v27, %v297_v61  ;;  %199 = vpow2.f32 %v130_v25 }
  0xae   :  { %161 = vst.msk [vmem:[%s382_s3 + $0x38] sm:$0xff] %vm153_vm1, %v144_v28  ;;  %201 = vpow2.f32 %v128_v26  ;;  %v102_v30 = vpop.xlane.xlu1 %101 }
  0xaf   :  { %v99_v31 = vpop.xlane.xlu0 %98  ;;  %v192_v32 = vpop.eup %191  ;;  %160 = vst.msk [vmem:[%s382_s3 + $0x30] sm:$0xff] %vm153_vm1, %v143_v29  ;;  %v134_v33 = vmul.f32 1.442695, %v102_v30 }
  0xb0   :  { %v132_v34 = vmul.f32 1.442695, %v99_v31  ;;  %v194_v35 = vpop.eup %193  ;;  %v146_v36 = vmul.f32 %v192_v32, %v297_v61 }
  0xb1   :  { %v145_v37 = vmul.f32 %v194_v35, %v297_v61  ;;  %203 = vpow2.f32 %v134_v33 }
  0xb2   :  { %163 = vst.msk [vmem:[%s382_s3 + $0x48] sm:$0xff] %vm153_vm1, %v146_v36  ;;  %205 = vpow2.f32 %v132_v34 }
  0xb3   :  { %v196_v38 = vpop.eup %195  ;;  %162 = vst.msk [vmem:[%s382_s3 + $0x40] sm:$0xff] %vm153_vm1, %v145_v37 }
  0xb4   :  { %v198_v39 = vpop.eup %197  ;;  %v148_v40 = vmul.f32 %v196_v38, %v297_v61 }
  0xb5   :  { %v147_v41 = vmul.f32 %v198_v39, %v297_v61 }
  0xb6   :  { %165 = vst.msk [vmem:[%s382_s3 + $0x58] sm:$0xff] %vm153_vm1, %v148_v40 }
  0xb7   :  { %v200_v42 = vpop.eup %199  ;;  %164 = vst.msk [vmem:[%s382_s3 + $0x50] sm:$0xff] %vm153_vm1, %v147_v41 }
  0xb8   :  { %v202_v43 = vpop.eup %201  ;;  %v150_v44 = vmul.f32 %v200_v42, %v297_v61 }
  0xb9   :  { %v149_v45 = vmul.f32 %v202_v43, %v297_v61 }
  0xba   :  { %167 = vst.msk [vmem:[%s382_s3 + $0x68] sm:$0xff] %vm153_vm1, %v150_v44 }
  0xbb   :  { %v204_v46 = vpop.eup %203  ;;  %166 = vst.msk [vmem:[%s382_s3 + $0x60] sm:$0xff] %vm153_vm1, %v149_v45 }
  0xbc   :  { %v206_v47 = vpop.eup %205  ;;  %v152_v48 = vmul.f32 %v204_v46, %v297_v61 }
  0xbd   :  { %v151_v49 = vmul.f32 %v206_v47, %v297_v61 }
  0xbe   :  { %169 = vst.msk [vmem:[%s382_s3 + $0x78] sm:$0xff] %vm153_vm1, %v152_v48 }
  0xbf   :  { %168 = vst.msk [vmem:[%s382_s3 + $0x70] sm:$0xff] %vm153_vm1, %v151_v49 }

</bundles_post_ra>
